<compile_context>
chip_gen: v6e
topology: v6e:2x2x1
jax: 0.10.0
libtpu: 0.0.40
codegen_flags: <defaults>
</compile_context>

<pallas_src>
import math
import jax
import jax.numpy as jnp
from jax.experimental import pallas as pl
from jax.experimental.pallas import tpu as pltpu


def _round_up(x: int, m: int) -> int:
    return (x + m - 1) // m * m


def _temporal_decay_dense_kernel(delta_ref, wt_ref, b_ref, out_ref):
    # delta_ref: (TM, Kp), wt_ref: (Kp, Np)  (already W^T), b_ref: (1, Np) f32
    x = delta_ref[...]
    wt = wt_ref[...]
    b = b_ref[...]
    # MXU matmul (f32 accumulate) + bias + relu + exp(-x) on VPU/EUP.
    lin = jnp.dot(x, wt, preferred_element_type=jnp.float32) + b
    gamma = jnp.exp(-jnp.maximum(lin, 0.0))
    out_ref[...] = gamma.astype(out_ref.dtype)


def _temporal_decay_diag_kernel(delta_ref, wdiag_ref, b_ref, out_ref):
    # diag case: (W * I) reduces the linear layer to an elementwise scale.
    # delta_ref: (TM, Np), wdiag_ref: (1, Np) f32, b_ref: (1, Np) f32
    x = delta_ref[...].astype(jnp.float32)
    w = wdiag_ref[...]
    b = b_ref[...]
    lin = x * w + b
    gamma = jnp.exp(-jnp.maximum(lin, 0.0))
    out_ref[...] = gamma.astype(out_ref.dtype)


def temporal_decay(delta, W, b, diag: bool = False, tm: int = 1024):
    """delta: [B, T, input_size]; W: [output_size, input_size]; b: [output_size]."""
    B, T, K = delta.shape
    N = W.shape[0]
    M = B * T
    dtype = delta.dtype
    itemsize = jnp.dtype(dtype).itemsize

    # Lane-dense padding of the feature dims (last dim of every block = 128k).
    Kp = _round_up(K, 128)
    Np = _round_up(N, 128)

    # Resident-weight VMEM footprint (kept live across all grid steps).
    if diag:
        resident_bytes = 2 * Np * 4
    else:
        resident_bytes = Kp * Np * itemsize + Np * 4

    # Row tile: multiple of 8, up to `tm` rows; shrink until double-buffered
    # in/out tiles + resident weights fit in a conservative VMEM budget
    # (v7x physical VMEM is only 64 MiB).
    vmem_budget = 40 << 20
    TM = min(tm, _round_up(M, 8))
    while TM > 8:
        tiles = 2 * TM * (Kp + Np) * itemsize
        if tiles + resident_bytes <= vmem_budget:
            break
        TM = max(8, _round_up(TM // 2, 8))

    Mp = _round_up(M, TM)
    grid = (Mp // TM,)

    delta2d = delta.reshape(M, K)
    if Mp != M or Kp != K:
        delta2d = jnp.pad(delta2d, ((0, Mp - M), (0, Kp - K)))

    # Bias kept in f32: the dense matmul accumulates in f32 anyway, and the
    # diag path upcasts; avoids a double-rounding through bf16.
    b_p = jnp.pad(b.astype(jnp.float32), (0, Np - N)).reshape(1, Np)

    if diag:
        assert W.shape[0] == W.shape[1], "diag=True requires square W"
        # (W * I) is diagonal -> the linear layer is an elementwise scale.
        w_diag = jnp.diagonal(W).astype(jnp.float32)
        w_p = jnp.pad(w_diag, (0, Np - N)).reshape(1, Np)
        kernel = _temporal_decay_diag_kernel
        in_specs = [
            pl.BlockSpec((TM, Np), lambda i: (i, 0)),   # delta tile (K==N here)
            pl.BlockSpec((1, Np), lambda i: (0, 0)),    # diag(W), resident
            pl.BlockSpec((1, Np), lambda i: (0, 0)),    # bias, resident
        ]
        args = (delta2d, w_p, b_p)
        flops = 2 * M * N
        weight_bytes = 4 * 2 * N
        tile_in_bytes = TM * Np * itemsize
    else:
        # Pre-transpose the weight once in the wrapper: kernel sees [Kp, Np].
        wt_p = jnp.pad(W.T.astype(dtype), ((0, Kp - K), (0, Np - N)))
        kernel = _temporal_decay_dense_kernel
        in_specs = [
            pl.BlockSpec((TM, Kp), lambda i: (i, 0)),   # delta tile
            pl.BlockSpec((Kp, Np), lambda i: (0, 0)),   # W^T, resident
            pl.BlockSpec((1, Np), lambda i: (0, 0)),    # bias, resident
        ]
        args = (delta2d, wt_p, b_p)
        flops = 2 * M * N * K
        weight_bytes = N * K * itemsize + 4 * N
        tile_in_bytes = TM * Kp * itemsize

    tile_out_bytes = TM * Np * itemsize
    # Double-buffered in/out tiles + resident weights + headroom; keep well
    # under v7x's 64 MiB physical VMEM.
    vmem_bytes = 2 * (tile_in_bytes + tile_out_bytes) + resident_bytes + (4 << 20)
    vmem_bytes = int(min(max(vmem_bytes, 8 << 20), 48 << 20))

    cost = pl.CostEstimate(
        flops=flops,
        transcendentals=M * N,
        bytes_accessed=itemsize * (M * K + M * N) + weight_bytes,
    )

    out = pl.pallas_call(
        kernel,
        out_shape=jax.ShapeDtypeStruct((Mp, Np), dtype),
        grid_spec=pltpu.PrefetchScalarGridSpec(
            num_scalar_prefetch=0,
            grid=grid,
            in_specs=in_specs,
            out_specs=pl.BlockSpec((TM, Np), lambda i: (i, 0)),
        ),
        compiler_params=pltpu.CompilerParams(
            dimension_semantics=("parallel",),
            vmem_limit_bytes=vmem_bytes,
        ),
        cost_estimate=cost,
    )(*args)

    return out[:M, :N].reshape(B, T, N)


if __name__ == "__main__":
    batch, steps = 2, 8
    input_size, output_size = 32, 32

    key = jax.random.PRNGKey(0)
    k_delta, k_w, k_b = jax.random.split(key, 3)

    # Deterministic parameter init mimicking PyTorch _reset_parameters:
    # uniform(-std, std), std = 1/sqrt(output_size)
    std = 1.0 / math.sqrt(output_size)
    W = jax.random.uniform(k_w, (output_size, input_size),
                           minval=-std, maxval=std, dtype=jnp.float32)
    b = jax.random.uniform(k_b, (output_size,),
                           minval=-std, maxval=std, dtype=jnp.float32)

    # time-gap input (non-negative, like real deltas)
    delta = jax.random.uniform(k_delta, (batch, steps, input_size),
                               minval=0.0, maxval=5.0, dtype=jnp.float32)

    # --- dense path (diag=False) ---
    gamma = jax.block_until_ready(temporal_decay(delta, W, b, diag=False))
    ref = jnp.exp(-jnp.maximum(jnp.einsum("btk,nk->btn", delta, W) + b, 0.0))
    assert gamma.shape == (batch, steps, output_size)
    assert jnp.allclose(gamma, ref, atol=1e-5, rtol=1e-5)

    # --- diag path (diag=True) ---
    gamma_d = jax.block_until_ready(temporal_decay(delta, W, b, diag=True))
    W_diag = W * jnp.eye(output_size, dtype=W.dtype)
    ref_d = jnp.exp(-jnp.maximum(jnp.einsum("btk,nk->btn", delta, W_diag) + b, 0.0))
    assert gamma_d.shape == (batch, steps, output_size)
    assert jnp.allclose(gamma_d, ref_d, atol=1e-5, rtol=1e-5)

    print("KERNEL_OK")
</pallas_src>

<mosaic_0001>
module attributes {stable_mosaic.version = 11 : i64} {
  func.func @_temporal_decay_dense_kernel(%arg0: i32, %arg1: memref<16x128xf32, #tpu.memory_space<vmem>>, %arg2: memref<128x128xf32, #tpu.memory_space<vmem>>, %arg3: memref<1x128xf32, #tpu.memory_space<vmem>>, %arg4: memref<16x128xf32, #tpu.memory_space<vmem>>) attributes {dimension_semantics = [#tpu.dimension_semantics<parallel>], iteration_bounds = array<i64: 1>, scalar_prefetch = 0 : i64, scratch_operands = 0 : i64, tpu.core_type = #tpu.core_type<tc>, window_params = [{transform_indices = @transform_0, window_bounds = array<i64: 16, 128>}, {pipeline_mode = #tpu.pipeline_mode<synchronous>, transform_indices = @transform_1, window_bounds = array<i64: 128, 128>}, {pipeline_mode = #tpu.pipeline_mode<synchronous>, transform_indices = @transform_2, window_bounds = array<i64: 1, 128>}, {transform_indices = @transform_3, window_bounds = array<i64: 16, 128>}]} {
    %c0 = arith.constant 0 : index
    %c0_0 = arith.constant 0 : index
    %0 = vector.load %arg1[%c0, %c0_0] : memref<16x128xf32, #tpu.memory_space<vmem>>, vector<16x128xf32>
    %c0_1 = arith.constant 0 : index
    %c0_2 = arith.constant 0 : index
    %1 = vector.load %arg2[%c0_1, %c0_2] : memref<128x128xf32, #tpu.memory_space<vmem>>, vector<128x128xf32>
    %c0_3 = arith.constant 0 : index
    %c0_4 = arith.constant 0 : index
    %2 = vector.load %arg3[%c0_3, %c0_4] : memref<1x128xf32, #tpu.memory_space<vmem>>, vector<1x128xf32>
    %cst = arith.constant dense<0.000000e+00> : vector<16x128xf32>
    %3 = tpu.matmul %0, %1, %cst {dimension_numbers = #tpu.dot_dimension_numbers<[1], [0], [0], [1], [0, 0, 1, 1], [], []>} : vector<16x128xf32>, vector<128x128xf32>, vector<16x128xf32> -> vector<16x128xf32>
    %4 = vector.broadcast %2 : vector<1x128xf32> to vector<16x128xf32>
    %5 = arith.addf %3, %4 : vector<16x128xf32>
    %cst_5 = arith.constant 0.000000e+00 : f32
    %6 = vector.broadcast %cst_5 : f32 to vector<16x128xf32>
    %7 = arith.maximumf %5, %6 : vector<16x128xf32>
    %cst_6 = arith.constant 0.000000e+00 : f32
    %8 = vector.broadcast %cst_6 : f32 to vector<16x128xf32>
    %9 = arith.subf %8, %7 : vector<16x128xf32>
    %10 = math.exp %9 : vector<16x128xf32>
    %c0_7 = arith.constant 0 : index
    %c0_8 = arith.constant 0 : index
    %11 = vector.load %arg4[%c0_7, %c0_8] : memref<16x128xf32, #tpu.memory_space<vmem>>, vector<16x128xf32>
    tpu.vector_store %arg4[%c0_7, %c0_8], %10 {strides = array<i32>} : memref<16x128xf32, #tpu.memory_space<vmem>>, vector<16x128xf32>,
    return
  }
  func.func @transform_0(%arg0: i32) -> (i32, i32) {
    %c0_i32 = arith.constant 0 : i32
    %c0_i32_0 = arith.constant 0 : i32
    return %arg0, %c0_i32 : i32, i32
  }
  func.func @transform_1(%arg0: i32) -> (i32, i32) {
    %c0_i32 = arith.constant 0 : i32
    %c0_i32_0 = arith.constant 0 : i32
    %c0_i32_1 = arith.constant 0 : i32
    return %c0_i32, %c0_i32_0 : i32, i32
  }
  func.func @transform_2(%arg0: i32) -> (i32, i32) {
    %c0_i32 = arith.constant 0 : i32
    %c0_i32_0 = arith.constant 0 : i32
    %c0_i32_1 = arith.constant 0 : i32
    return %c0_i32, %c0_i32_0 : i32, i32
  }
  func.func @transform_3(%arg0: i32) -> (i32, i32) {
    %c0_i32 = arith.constant 0 : i32
    %c0_i32_0 = arith.constant 0 : i32
    return %arg0, %c0_i32 : i32, i32
  }
}

</mosaic_0001>

<bundles_post_ra>
// kernel: tpu_custom_call.1
= control target key start
LH: loop header
LB: loop body
LE: loop exit
PB: predicated region body
PF: predicated region fallthrough
CT: control target
= control target key end

     0   :  { %8 = vsyncpa [#allocation3], 0  ;;  %s346_s0 = inlined_call_operand.hbm [shape: f32[16,128], index: 0, kind: input, shape index: {}]   ;;  %s347_s1 = inlined_call_operand.hbm [shape: f32[128,128], index: 1, kind: input, shape index: {}]   ;;  %s348_s2 = inlined_call_operand.vmem [shape: f32[1,128], index: 2, kind: input, shape index: {}]   ;;  %s349_s3 = inlined_call_operand.hbm [shape: f32[16,128], index: 3, kind: output, shape index: {}]  }
   0x1   :  { %9 = vsyncpa [#allocation6], 0 }
   0x2   :  { %10 = vsyncpa [#allocation4], 0  ;;  %s300_s12 = smov [#allocation2]  }
   0x3   :  { %s16_s13 = sshll.u32 %s300_s12, 4  ;;  %s17_s13 = int_to_ptr.vmem [resolvable:$true] %s16_s13 }
   0x4   :  { %s242_s14 = scalar_lea.vmem %s17_s13, 256  ;;  %p247_p1 = scmp.lt.s32.totalorder %s17_s13, %s17_s13 }
   0x5   :  { %p243_p0 = scmp.ne.s32.totalorder %s17_s13, %s242_s14  ;;  %p248_p2 = scmp.lt.s32.totalorder %s242_s14, %s242_s14 }
   0x7   :  { %p249_p3 = por %p248_p2, %p247_p1 }
   0x9   :  { %p250_p4 = pnand %p249_p3, %p243_p0 }
   0xb   :  { %253 = shalt.err (!%p250_p4)
}
   0xc   :  { %s301_s15 = smov 128   ;;  %s302_s16 = smov 8  }
   0xd   :  { %22 = dma.hbm_to_vmem [thread:$0]  %s346_s0, 256, %s17_s13, [#allocation3], %s301_s15, %s301_s15, %s302_s16  }
   0xe   :  { %s303_s19 = smov [#allocation5]  }
   0xf   :  { %s28_s20 = sshll.u32 %s303_s19, 4  ;;  %s29_s20 = int_to_ptr.vmem [resolvable:$true] %s28_s20 }
  0x10   :  { %s262_s21 = scalar_lea.vmem %s29_s20, 2048  ;;  %p267_p6 = scmp.lt.s32.totalorder %s29_s20, %s29_s20 }
  0x11   :  { %p263_p5 = scmp.ne.s32.totalorder %s29_s20, %s262_s21  ;;  %p268_p7 = scmp.lt.s32.totalorder %s262_s21, %s262_s21 }
  0x13   :  { %p269_p8 = por %p268_p7, %p267_p6 }
  0x15   :  { %p270_p9 = pnand %p269_p8, %p263_p5 }
  0x17   :  { %273 = shalt.err (!%p270_p9)
}
  0x18   :  { %34 = dma.hbm_to_vmem [thread:$0]  %s347_s1, 2048, %s29_s20, [#allocation6], %s301_s15, %s301_s15, %s302_s16  }
  0x19   :  { %294 = dma.done.wait [#allocation3], 256  }
  0x1a   :  { %295 = vsyncadd [#allocation3], 4294967040 }
  0x1b   :  { %296 = dma.done.wait [#allocation6], 2048  }
  0x1c   :  { %297 = vsyncadd [#allocation6], 4294965248  ;;  %v60_v0 = vld [vmem:[#allocation5 + $0x78] sm:$0xff]  ;;  %v59_v1 = vld [vmem:[#allocation5 + $0x70] sm:$0xff]  ;;  %s304_s24 = smov [#allocation7]  }
  0x1d   :  { %190 = vmatprep.subr.mxu0 %v60_v0  ;;  %v58_v2 = vld [vmem:[#allocation5 + $0x68] sm:$0xff]  ;;  %v57_v3 = vld [vmem:[#allocation5 + $0x60] sm:$0xff]  ;;  %v43_v4 = vld [vmem:[#allocation2] sm:$0xff]  ;;  %s158_s25 = sshll.u32 %s304_s24, 4  ;;  %s159_s25 = int_to_ptr.vmem [resolvable:$true] %s158_s25 }
  0x1e   :  { %191 = vmatpush3.msra.mxu0 %v60_v0  ;;  %v56_v5 = vld [vmem:[#allocation5 + $0x58] sm:$0xff]  ;;  %222 = vmatprep.mubr.f32.mxu0 %v43_v4  ;;  %v55_v6 = vld [vmem:[#allocation5 + $0x50] sm:$0xff]  ;;  %v54_v7 = vld [vmem:[#allocation5 + $0x48] sm:$0xff]  ;;  %p279_p11 = scmp.lt.s32.totalorder %s159_s25, %s159_s25 }
  0x1f   :  { %192 = vmatprep.subr.mxu0 %v59_v1  ;;  %v53_v8 = vld [vmem:[#allocation5 + $0x40] sm:$0xff]  ;;  %v52_v9 = vld [vmem:[#allocation5 + $0x38] sm:$0xff]  ;;  %v51_v10 = vld [vmem:[#allocation5 + $0x30] sm:$0xff] }
  0x20   :  { %193 = vmatpush3.msra.mxu0 %v59_v1  ;;  %v50_v11 = vld [vmem:[#allocation5 + $0x28] sm:$0xff]  ;;  %v49_v12 = vld [vmem:[#allocation5 + $0x20] sm:$0xff]  ;;  %v48_v13 = vld [vmem:[#allocation5 + $0x18] sm:$0xff] }
  0x21   :  { %194 = vmatprep.subr.mxu0 %v58_v2  ;;  %v47_v14 = vld [vmem:[#allocation5 + $0x10] sm:$0xff]  ;;  %v46_v15 = vld [vmem:[#allocation5 + $0x8] sm:$0xff]  ;;  %v45_v16 = vld [vmem:[#allocation5] sm:$0xff] }
  0x22   :  { %195 = vmatpush3.msra.mxu0 %v58_v2  ;;  %v44_v17 = vld [vmem:[#allocation2 + $0x8] sm:$0xff]  ;;  %v171_v18 = vld [vmem:[%s348_s2] ss:$0 sm:$0xff]  ;;  %s274_s2 = scalar_lea.vmem %s159_s25, 256 }
  0x23   :  { %196 = vmatprep.subr.mxu0 %v57_v3  ;;  %p275_p10 = scmp.ne.s32.totalorder %s159_s25, %s274_s2  ;;  %p280_p12 = scmp.lt.s32.totalorder %s274_s2, %s274_s2 }
  0x24   :  { %197 = vmatpush3.msra.mxu0 %v57_v3 }
  0x25   :  { %198 = vmatprep.subr.mxu0 %v56_v5  ;;  %p281_p13 = por %p280_p12, %p279_p11 }
  0x26   :  { %199 = vmatpush3.msra.mxu0 %v56_v5 }
  0x27   :  { %200 = vmatprep.subr.mxu0 %v55_v6  ;;  %p282_p0 = pnand %p281_p13, %p275_p10 }
  0x28   :  { %201 = vmatpush3.msra.mxu0 %v55_v6 }
  0x29   :  { %202 = vmatprep.subr.mxu0 %v54_v7 }
  0x2a   :  { %203 = vmatpush3.msra.mxu0 %v54_v7 }
  0x2b   :  { %204 = vmatprep.subr.mxu0 %v53_v8 }
  0x2c   :  { %205 = vmatpush3.msra.mxu0 %v53_v8 }
  0x2d   :  { %206 = vmatprep.subr.mxu0 %v52_v9 }
  0x2e   :  { %207 = vmatpush3.msra.mxu0 %v52_v9 }
  0x2f   :  { %208 = vmatprep.subr.mxu0 %v51_v10 }
  0x30   :  { %209 = vmatpush3.msra.mxu0 %v51_v10 }
  0x31   :  { %210 = vmatprep.subr.mxu0 %v50_v11 }
  0x32   :  { %211 = vmatpush3.msra.mxu0 %v50_v11 }
  0x33   :  { %212 = vmatprep.subr.mxu0 %v49_v12 }
  0x34   :  { %213 = vmatpush3.msra.mxu0 %v49_v12 }
  0x35   :  { %214 = vmatprep.subr.mxu0 %v48_v13 }
  0x36   :  { %215 = vmatpush3.msra.mxu0 %v48_v13 }
  0x37   :  { %216 = vmatprep.subr.mxu0 %v47_v14 }
  0x38   :  { %217 = vmatpush3.msra.mxu0 %v47_v14 }
  0x39   :  { %218 = vmatprep.subr.mxu0 %v46_v15 }
  0x3a   :  { %219 = vmatpush3.msra.mxu0 %v46_v15 }
  0x3b   :  { %220 = vmatprep.subr.mxu0 %v45_v16 }
  0x3c   :  { %221 = vmatpush3.msra.mxu0 %v45_v16 }
  0x3d   :  { %223 = vmatmul.mubr.f32.vlgmr.msra.gmra.mxu0 %v44_v17 }
  0xfd   :  { %v224_v19 = vpop.f32.mrf.mxu0 }
  0xfe   :  { %v140_v20 = vadd.f32 %v224_v19, %v171_v18 }
  0xff   :  { %v134_v21 = vpop.f32.mrf.mxu0 }
 0x100   :  { %v144_v22 = vmax.f32 %v140_v20, 0.0  ;;  %v135_v23 = vadd.f32 %v171_v18, %v134_v21 }
 0x102   :  { %v146_v24 = vsub.f32 0.0, %v144_v22  ;;  %v143_v25 = vmax.f32 %v135_v23, 0.0 }
 0x104   :  { %v149_v26 = vmul.f32 1.442695, %v146_v24  ;;  %v145_v27 = vsub.f32 0.0, %v143_v25 }
 0x106   :  { %230 = vpow2.f32 %v149_v26  ;;  %v147_v28 = vmul.f32 1.442695, %v145_v27 }
 0x108   :  { %232 = vpow2.f32 %v147_v28 }
 0x113   :  { %v231_v29 = vpop.eup %230 }
 0x114   :  { %152 = vst [vmem:[#allocation7 + $0x8] sm:$0xff] %v231_v29 }
 0x115   :  { %v233_v30 = vpop.eup %232 }
 0x116   :  { %151 = vst [vmem:[#allocation7] sm:$0xff] %v233_v30 }
 0x117   :  { %285 = shalt.err (!%p282_p0)
}
 0x118   :  { %164 = dma.vmem_to_hbm [thread:$0]  %s159_s25, 256, %s349_s3, [#allocation4], %s301_s15, %s301_s15, %s302_s16  }
 0x119   :  { %298 = dma.done.wait [#allocation4], 256  }
 0x11a   :  { %299 = vsyncadd [#allocation4], 4294967040 }
 0x11b   :  { %168 = vsyncpa [#allocation3], 1 }
 0x11c   :  { %169 = vsyncpa [#allocation6], 1 }
 0x11d   :  { %170 = vsyncpa [#allocation4], 1 }

</bundles_post_ra>
